<compile_context>
chip_gen: v7x
topology: tpu7x:2x2x1
jax: 0.10.0
libtpu: 0.0.40
codegen_flags: <defaults>
</compile_context>

<pallas_src>
import functools

import jax
import jax.numpy as jnp
from jax.experimental import pallas as pl
from jax.experimental.pallas import tpu as pltpu


_COL_CANDIDATES = (4096, 2048, 1024, 512, 256, 128)


@functools.cache
def _has_bf16_vpu() -> bool:
    """True on chips with a bf16-capable VPU/EUP (v6e, v7x)."""
    try:
        kind = jax.devices()[0].device_kind.lower()
    except Exception:
        return False
    return ("v6" in kind) or ("v7" in kind)


def _swish_kernel(x_ref, o_ref, *, native_half: bool):
    x = x_ref[...]
    if native_half and x.dtype == jnp.bfloat16:
        # bf16-native path: sigmoid(x) = 0.5*tanh(0.5*x) + 0.5 is a single
        # EUP op; avoids the f32 upcast (halves vreg pressure / VALU work)
        # and keeps any divide off the VALU.  Only taken on v6e/v7x.
        y = x * (jnp.tanh(x * 0.5) * 0.5 + 0.5)
    else:
        # f32 internal compute: required on v5e (no bf16 VPU/EUP) and the
        # tightest numerical match to the torch reference.
        xf = x.astype(jnp.float32)
        y = xf * jax.nn.sigmoid(xf)
    o_ref[...] = y.astype(o_ref.dtype)


def swish(x: jax.Array, *, target_block_bytes: int = 4 * 1024 * 1024) -> jax.Array:
    """Elementwise Swish / SiLU: x * sigmoid(x). Works for any input shape."""
    orig_shape = x.shape
    dtype = x.dtype
    n = x.size
    if n == 0:
        return x

    flat = jnp.ravel(x)

    # Lane-dense slab width: largest multiple of 128 (<= 4096) dividing n
    # exactly, so the common case needs zero padding and zero trailing slice.
    cols = next((c for c in _COL_CANDIDATES if n % c == 0), None)
    if cols is None:
        # Rare ragged case (n not a multiple of 128).  A padded Pallas path
        # would need a pre-pad concat plus a post-slice -- each a full extra
        # HBM round trip.  XLA's fused elementwise already sits at the HBM
        # roofline for this memory-bound op, so use it directly here.
        xf = flat.astype(jnp.float32)
        return (xf * jax.nn.sigmoid(xf)).astype(dtype).reshape(orig_shape)

    rows = n // cols
    x2d = flat.reshape(rows, cols)  # zero-copy view in the common case

    itemsize = jnp.dtype(dtype).itemsize
    # Sublane packing: 8 rows for 32-bit, 16 for 16-bit, 32 for 8-bit dtypes.
    sublane = max(8, 32 // itemsize)
    # ~4 MiB per block buffer, sublane-aligned.
    target_rows = max(
        sublane, (target_block_bytes // (cols * itemsize)) // sublane * sublane
    )

    if rows <= sublane:
        block_rows = rows  # tiny input: one (possibly short) block
    else:
        # Cap at half the rows (sublane-aligned) so the grid has >= 2 steps;
        # on v7x the "parallel" axis then shards across both TensorCores.
        half_rows = max(sublane, (rows // 2) // sublane * sublane)
        block_rows = min(target_rows, half_rows)

    grid = (pl.cdiv(rows, block_rows),)

    kernel = functools.partial(_swish_kernel, native_half=_has_bf16_vpu())

    out2d = pl.pallas_call(
        kernel,
        out_shape=jax.ShapeDtypeStruct((rows, cols), dtype),
        grid_spec=pltpu.PrefetchScalarGridSpec(
            num_scalar_prefetch=0,
            grid=grid,
            in_specs=[pl.BlockSpec((block_rows, cols), lambda i: (i, 0))],
            out_specs=pl.BlockSpec((block_rows, cols), lambda i: (i, 0)),
        ),
        compiler_params=pltpu.CompilerParams(
            # Shards the 1-D grid across TensorCores on megacore parts (v7x);
            # measured no-op on single-TC v5e/v6e.
            dimension_semantics=("parallel",),
            # Double-buffered in+out at 4 MiB/block = 16 MiB; pin the scoped
            # VMEM limit so this also compiles on v5e (16 MiB default scope)
            # while staying well inside v7x's 64 MiB physical VMEM per TC.
            vmem_limit_bytes=32 * 1024 * 1024,
        ),
    )(x2d)

    return out2d.reshape(orig_shape)


if __name__ == "__main__":
    key = jax.random.PRNGKey(0)

    # NCHW input, matching typical PyTorch conv-activation usage.
    x = jax.random.normal(key, (2, 4, 16, 16), dtype=jnp.float32)
    y = swish(x)
    jax.block_until_ready(y)
    y_ref = x * jax.nn.sigmoid(x)
    assert y.shape == x.shape and y.dtype == x.dtype
    assert jnp.allclose(y, y_ref, atol=1e-6, rtol=1e-6)

    # Larger input exercising a multi-step (>= 2) grid for megacore sharding.
    x_big = jax.random.normal(jax.random.PRNGKey(1), (2, 16, 64, 64), dtype=jnp.float32)
    y_big = swish(x_big)
    jax.block_until_ready(y_big)
    assert jnp.allclose(y_big, x_big * jax.nn.sigmoid(x_big), atol=1e-6, rtol=1e-6)

    # Ragged size (n % 128 != 0) exercises the fused-XLA fallback path.
    x_odd = jax.random.normal(jax.random.PRNGKey(2), (3, 5, 7), dtype=jnp.float32)
    y_odd = swish(x_odd)
    jax.block_until_ready(y_odd)
    assert jnp.allclose(y_odd, x_odd * jax.nn.sigmoid(x_odd), atol=1e-6, rtol=1e-6)

    print("KERNEL_OK")
</pallas_src>

<mosaic_0001>
module attributes {stable_mosaic.version = 11 : i64} {
  func.func @_swish_kernel(%arg0: i32, %arg1: memref<1x2048xf32, #tpu.memory_space<vmem>>, %arg2: memref<1x2048xf32, #tpu.memory_space<vmem>>) attributes {dimension_semantics = [#tpu.dimension_semantics<parallel>], iteration_bounds = array<i64: 1>, scalar_prefetch = 0 : i64, scratch_operands = 0 : i64, tpu.core_type = #tpu.core_type<tc>, window_params = [{transform_indices = @transform_0, window_bounds = array<i64: 1, 2048>}, {transform_indices = @transform_1, window_bounds = array<i64: 1, 2048>}]} {
    %c0 = arith.constant 0 : index
    %c0_0 = arith.constant 0 : index
    %0 = vector.load %arg1[%c0, %c0_0] : memref<1x2048xf32, #tpu.memory_space<vmem>>, vector<1x2048xf32>
    %1 = arith.negf %0 : vector<1x2048xf32>
    %2 = math.exp %1 : vector<1x2048xf32>
    %cst = arith.constant 1.000000e+00 : f32
    %3 = vector.broadcast %cst : f32 to vector<1x2048xf32>
    %4 = arith.addf %3, %2 : vector<1x2048xf32>
    %5 = arith.divf %3, %4 : vector<1x2048xf32>
    %6 = arith.mulf %0, %5 : vector<1x2048xf32>
    %c0_1 = arith.constant 0 : index
    %c0_2 = arith.constant 0 : index
    %7 = vector.load %arg2[%c0_1, %c0_2] : memref<1x2048xf32, #tpu.memory_space<vmem>>, vector<1x2048xf32>
    tpu.vector_store %arg2[%c0_1, %c0_2], %6 {strides = array<i32>} : memref<1x2048xf32, #tpu.memory_space<vmem>>, vector<1x2048xf32>,
    return
  }
  func.func @transform_0(%arg0: i32) -> (i32, i32) {
    %c0_i32 = arith.constant 0 : i32
    %c0_i32_0 = arith.constant 0 : i32
    return %arg0, %c0_i32 : i32, i32
  }
  func.func @transform_1(%arg0: i32) -> (i32, i32) {
    %c0_i32 = arith.constant 0 : i32
    %c0_i32_0 = arith.constant 0 : i32
    return %arg0, %c0_i32 : i32, i32
  }
}

</mosaic_0001>

<bundles_post_ra>
// kernel: tpu_custom_call.1
= control target key start
LH: loop header
LB: loop body
LE: loop exit
PB: predicated region body
PF: predicated region fallthrough
CT: control target
= control target key end

     0   :  { %6 = vsyncpa [#allocation3], 0  ;;  %s150_s0 = inlined_call_operand.hbm [shape: f32[1,2048], index: 0, kind: input, shape index: {}]   ;;  %s151_s1 = inlined_call_operand.hbm [shape: f32[1,2048], index: 1, kind: output, shape index: {}]  }
   0x1   :  { %7 = vsyncpa [#allocation4], 0  ;;  %s114_s6 = smov [#allocation2]   ;;  %s66_s10 = scalar_lea.hbm %s150_s0, 256 }
   0x2   :  { %s14_s7 = sshll.u32 %s114_s6, 4  ;;  %p67_p0 = scmp.ne.s32.totalorder %s150_s0, %s66_s10  ;;  %s15_s7 = int_to_ptr.vmem [resolvable:$true] %s14_s7 }
   0x3   :  { %p70_p1 = scmp.lt.u32.totalorder %s66_s10, %s150_s0 }
   0x5   :  { %p72_p2 = pnand %p70_p1, %p67_p0 }
   0x7   :  { %75 = shalt.err (!%p72_p2)
}
   0x8   :  { %s76_s15 = scalar_lea.vmem %s15_s7, 256  ;;  %p81_p4 = scmp.lt.s32.totalorder %s15_s7, %s15_s7 }
   0x9   :  { %p77_p3 = scmp.ne.s32.totalorder %s15_s7, %s76_s15  ;;  %p82_p5 = scmp.lt.s32.totalorder %s76_s15, %s76_s15 }
   0xb   :  { %p83_p6 = por %p82_p5, %p81_p4 }
   0xd   :  { %p84_p7 = pnand %p83_p6, %p77_p3 }
   0xf   :  { %87 = shalt.err (!%p84_p7)
}
  0x10   :  { %17 = dma.hbm_to_vmem [thread:$0]  %s150_s0, 256, %s15_s7, [#allocation3]  }
  0x11   :  { %110 = dma.done.wait [#allocation3], 256  }
  0x12   :  { %111 = vsyncadd [#allocation3], 4294967040  ;;  %v21_v0 = vld [vmem:[#allocation2] sm:$0xff]  ;;  %v22_v1 = vld [vmem:[#allocation2 + $0x8] sm:$0xff]  ;;  %s115_s18 = smov [#allocation5]  }
  0x13   :  { %v54_v2 = vmul.f32 -1.442695, %v21_v0  ;;  %v55_v3 = vmul.f32 -1.442695, %v22_v1  ;;  %s45_s19 = sshll.u32 %s115_s18, 4  ;;  %s46_s19 = int_to_ptr.vmem [resolvable:$true] %s45_s19 }
  0x14   :  { %s88_s0 = scalar_lea.vmem %s46_s19, 256  ;;  %p93_p9 = scmp.lt.s32.totalorder %s46_s19, %s46_s19 }
  0x15   :  { %58 = vpow2.f32 %v54_v2  ;;  %p89_p8 = scmp.ne.s32.totalorder %s46_s19, %s88_s0  ;;  %p94_p10 = scmp.lt.s32.totalorder %s88_s0, %s88_s0 }
  0x16   :  { %60 = vpow2.f32 %v55_v3 }
  0x17   :  { %p95_p11 = por %p94_p10, %p93_p9 }
  0x19   :  { %p96_p12 = pnand %p95_p11, %p89_p8 }
  0x1f   :  { %v59_v4 = vpop.eup %58 }
  0x20   :  { %v61_v5 = vpop.eup %60  ;;  %v29_v6 = vadd.f32 1.0, %v59_v4 }
  0x21   :  { %v30_v7 = vadd.f32 1.0, %v61_v5 }
  0x22   :  { %62 = vrcp.f32 %v29_v6 }
  0x23   :  { %64 = vrcp.f32 %v30_v7 }
  0x2c   :  { %v63_v8 = vpop.eup %62 }
  0x2d   :  { %v65_v9 = vpop.eup %64  ;;  %v35_v10 = vmul.f32 %v63_v8, %v21_v0 }
  0x2e   :  { %v36_v11 = vmul.f32 %v65_v9, %v22_v1 }
  0x2f   :  { %37 = vst [vmem:[#allocation5] sm:$0xff] %v35_v10 }
  0x30   :  { %38 = vst [vmem:[#allocation5 + $0x8] sm:$0xff] %v36_v11 }
  0x31   :  { %99 = shalt.err (!%p96_p12)
}
  0x32   :  { %s100_s22 = scalar_lea.hbm %s151_s1, 256 }
  0x33   :  { %p101_p13 = scmp.ne.s32.totalorder %s151_s1, %s100_s22  ;;  %p104_p0 = scmp.lt.u32.totalorder %s100_s22, %s151_s1 }
  0x35   :  { %p106_p1 = pnand %p104_p0, %p101_p13 }
  0x37   :  { %109 = shalt.err (!%p106_p1)
}
  0x38   :  { %48 = dma.vmem_to_hbm [thread:$0]  %s46_s19, 256, %s151_s1, [#allocation4]  }
  0x39   :  { %112 = dma.done.wait [#allocation4], 256  }
  0x3a   :  { %113 = vsyncadd [#allocation4], 4294967040 }
  0x3b   :  { %52 = vsyncpa [#allocation3], 1 }
  0x3c   :  { %53 = vsyncpa [#allocation4], 1 }

</bundles_post_ra>
